<compile_context>
chip_gen: v5e
topology: v5e:2x2
jax: 0.10.0
libtpu: 0.0.40
codegen_flags: <defaults>
</compile_context>

<pallas_src>
import jax
import jax.numpy as jnp
from jax.experimental import pallas as pl
from jax.experimental.pallas import tpu as pltpu


# Rough per-image FLOP threshold above which sharding images across TensorCores
# (v7x megacore) pays for the extra grid-step prologues.
_PARALLEL_GRID_MIN_FLOPS = 32 * 1024 * 1024


def _transition_kernel(x_ref, w_ref, u_ref, o_ref):
    # x_ref: (B, Cin, HW)     input block, channels x flattened pixels (NCHW order)
    # w_ref: (Cout, Cin)      1x1 ConvTranspose2d weight, pre-transposed
    # u_ref: (HW, 4*HW)       0/1 nearest-2x upsample matrix (built in wrapper)
    # o_ref: (B, Cout, 4*HW)  upsampled output, flat index q = (2h+a)*2W + (2w+b)
    B, Cin, HW = x_ref.shape
    QHW = u_ref.shape[1]

    xr = jnp.maximum(x_ref[...], 0.0)                              # ReLU (VPU)
    # Upsample first (Cin < Cout halves the big matmul's FLOPs); all B images in
    # one MXU call.  reshape only merges leading dims -> free (lane dim untouched).
    xe = jnp.dot(xr.reshape(B * Cin, HW), u_ref[...],
                 preferred_element_type=jnp.float32)               # (B*Cin, 4HW)  MXU
    xe = xe.reshape(B, Cin, QHW)                                   # free leading split
    for b in range(B):                                             # static unroll (B is 1 or N)
        o_ref[b] = jnp.dot(w_ref[...], xe[b],
                           preferred_element_type=jnp.float32
                           ).astype(o_ref.dtype)                   # (Cout, 4HW) lane-dense store


def transition_block(x_nchw, weight):
    """x_nchw: (N, Cin, H, W); weight: ConvTranspose2d weight (Cin, Cout, 1, 1).
    Returns (N, Cout, 2H, 2W), identical semantics to the PyTorch module."""
    N, Cin, H, W = x_nchw.shape
    Cout = weight.shape[1]
    HW = H * W
    QHW = 4 * HW
    itemsize = jnp.dtype(x_nchw.dtype).itemsize

    w_mat = weight[:, :, 0, 0].T                 # (Cout, Cin) -- tiny
    x_flat = x_nchw.reshape(N, Cin, HW)          # free row-major collapse

    # 0/1 upsample matrix, built once in the wrapper (constant-folded under jit):
    # output flat index q = (2h+a)*2W + (2w+b) sources pixel p = h*W + w.
    q = jnp.arange(QHW, dtype=jnp.int32)
    src = (q // (4 * W)) * W + (q // 2) % W
    U = (src[None, :] == jnp.arange(HW, dtype=jnp.int32)[:, None]).astype(jnp.float32)

    per_image_flops = 2 * Cin * HW * QHW + 2 * Cout * Cin * QHW
    if N > 1 and per_image_flops >= _PARALLEL_GRID_MIN_FLOPS:
        # Enough per-image work to shard images across TensorCores (v7x megacore).
        grid, B, semantics = (N,), 1, ("parallel",)
    else:
        # Toy / small sizes: single grid step, no per-step overhead (v5e/v6e: 1 TC).
        grid, B, semantics = (1,), N, ("arbitrary",)

    cost = pl.CostEstimate(
        flops=N * per_image_flops,
        transcendentals=0,
        bytes_accessed=(x_flat.size + w_mat.size + N * Cout * QHW) * itemsize
                       + U.size * 4,
    )

    out_flat = pl.pallas_call(
        _transition_kernel,
        grid=grid,
        in_specs=[
            pl.BlockSpec((B, Cin, HW), lambda n: (n, 0, 0)),   # B images per step
            pl.BlockSpec((Cout, Cin), lambda n: (0, 0)),       # full weight
            pl.BlockSpec((HW, QHW), lambda n: (0, 0)),         # constant index -> fetched once
        ],
        out_specs=pl.BlockSpec((B, Cout, QHW), lambda n: (n, 0, 0)),
        out_shape=jax.ShapeDtypeStruct((N, Cout, QHW), x_nchw.dtype),
        compiler_params=pltpu.CompilerParams(
            dimension_semantics=semantics,
            vmem_limit_bytes=32 * 1024 * 1024,   # explicit; well under v7x's 64 MiB
        ),
        cost_estimate=cost,
    )(x_flat, w_mat, U)

    # free reshape: flat q = (2h+a)*2W + (2w+b)  ->  (2H, 2W); final layout is NCHW
    return out_flat.reshape(N, Cout, 2 * H, 2 * W)


if __name__ == "__main__":
    key = jax.random.PRNGKey(0)
    kx, kw = jax.random.split(key)
    N, Cin, Cout, H, W = 2, 4, 8, 16, 16

    # deterministic inputs / parameters (synthetic, no checkpoint)
    x = jax.random.normal(kx, (N, Cin, H, W), dtype=jnp.float32)
    weight = jax.random.normal(kw, (Cin, Cout, 1, 1), dtype=jnp.float32) * 0.1

    fwd = jax.jit(transition_block)
    y = jax.block_until_ready(fwd(x, weight))

    # pure-JAX reference of the PyTorch forward (ConvTranspose2d has bias=False)
    xr = jnp.maximum(x, 0.0)
    conv = jnp.einsum("nihw,io->nohw", xr, weight[:, :, 0, 0])
    ref = jnp.repeat(jnp.repeat(conv, 2, axis=2), 2, axis=3)

    assert y.shape == (N, Cout, 2 * H, 2 * W)
    assert jnp.allclose(y, ref, atol=1e-5, rtol=1e-5)
    print("KERNEL_OK")
</pallas_src>

<mosaic_0001>
module attributes {stable_mosaic.version = 11 : i64} {
  func.func @_transition_kernel(%arg0: i32, %arg1: memref<2x4x256xf32, #tpu.memory_space<vmem>>, %arg2: memref<8x4xf32, #tpu.memory_space<vmem>>, %arg3: memref<256x1024xf32, #tpu.memory_space<vmem>>, %arg4: memref<2x8x1024xf32, #tpu.memory_space<vmem>>) attributes {dimension_semantics = [#tpu.dimension_semantics<arbitrary>], iteration_bounds = array<i64: 1>, scalar_prefetch = 0 : i64, scratch_operands = 0 : i64, tpu.core_type = #tpu.core_type<tc>, window_params = [{transform_indices = @transform_0, window_bounds = array<i64: 2, 4, 256>}, {pipeline_mode = #tpu.pipeline_mode<synchronous>, transform_indices = @transform_1, window_bounds = array<i64: 8, 4>}, {pipeline_mode = #tpu.pipeline_mode<synchronous>, transform_indices = @transform_2, window_bounds = array<i64: 256, 1024>}, {transform_indices = @transform_3, window_bounds = array<i64: 2, 8, 1024>}]} {
    %c0 = arith.constant 0 : index
    %c0_0 = arith.constant 0 : index
    %c0_1 = arith.constant 0 : index
    %0 = vector.load %arg1[%c0, %c0_0, %c0_1] : memref<2x4x256xf32, #tpu.memory_space<vmem>>, vector<2x4x256xf32>
    %cst = arith.constant 0.000000e+00 : f32
    %1 = vector.broadcast %cst : f32 to vector<2x4x256xf32>
    %2 = arith.maximumf %0, %1 : vector<2x4x256xf32>
    %3 = vector.shape_cast %2 : vector<2x4x256xf32> to vector<8x256xf32>
    %c0_2 = arith.constant 0 : index
    %c0_3 = arith.constant 0 : index
    %4 = vector.load %arg3[%c0_2, %c0_3] : memref<256x1024xf32, #tpu.memory_space<vmem>>, vector<256x1024xf32>
    %cst_4 = arith.constant dense<0.000000e+00> : vector<8x1024xf32>
    %5 = tpu.matmul %3, %4, %cst_4 {dimension_numbers = #tpu.dot_dimension_numbers<[1], [0], [0], [1], [0, 0, 1, 1], [], []>} : vector<8x256xf32>, vector<256x1024xf32>, vector<8x1024xf32> -> vector<8x1024xf32>
    %6 = vector.shape_cast %5 : vector<8x1024xf32> to vector<2x4x1024xf32>
    %c0_5 = arith.constant 0 : index
    %c0_6 = arith.constant 0 : index
    %7 = vector.load %arg2[%c0_5, %c0_6] : memref<8x4xf32, #tpu.memory_space<vmem>>, vector<8x4xf32>
    %8 = vector.extract_strided_slice %6 {offsets = [0, 0, 0], sizes = [1, 4, 1024], strides = [1, 1, 1]} : vector<2x4x1024xf32> to vector<1x4x1024xf32>
    %9 = vector.shape_cast %8 : vector<1x4x1024xf32> to vector<4x1024xf32>
    %cst_7 = arith.constant dense<0.000000e+00> : vector<8x1024xf32>
    %10 = tpu.matmul %7, %9, %cst_7 {dimension_numbers = #tpu.dot_dimension_numbers<[1], [0], [0], [1], [0, 0, 1, 1], [], []>} : vector<8x4xf32>, vector<4x1024xf32>, vector<8x1024xf32> -> vector<8x1024xf32>
    %c0_8 = arith.constant 0 : index
    %c0_9 = arith.constant 0 : index
    %c0_10 = arith.constant 0 : index
    %11 = vector.load %arg4[%c0_8, %c0_9, %c0_10] : memref<2x8x1024xf32, #tpu.memory_space<vmem>>, vector<1x8x1024xf32>
    %12 = vector.shape_cast %11 : vector<1x8x1024xf32> to vector<8x1024xf32>
    %13 = vector.shape_cast %10 : vector<8x1024xf32> to vector<1x8x1024xf32>
    tpu.vector_store %arg4[%c0_8, %c0_9, %c0_10], %13 {strides = array<i32>} : memref<2x8x1024xf32, #tpu.memory_space<vmem>>, vector<1x8x1024xf32>,
    %c0_11 = arith.constant 0 : index
    %c0_12 = arith.constant 0 : index
    %14 = vector.load %arg2[%c0_11, %c0_12] : memref<8x4xf32, #tpu.memory_space<vmem>>, vector<8x4xf32>
    %15 = vector.extract_strided_slice %6 {offsets = [1, 0, 0], sizes = [1, 4, 1024], strides = [1, 1, 1]} : vector<2x4x1024xf32> to vector<1x4x1024xf32>
    %16 = vector.shape_cast %15 : vector<1x4x1024xf32> to vector<4x1024xf32>
    %cst_13 = arith.constant dense<0.000000e+00> : vector<8x1024xf32>
    %17 = tpu.matmul %14, %16, %cst_13 {dimension_numbers = #tpu.dot_dimension_numbers<[1], [0], [0], [1], [0, 0, 1, 1], [], []>} : vector<8x4xf32>, vector<4x1024xf32>, vector<8x1024xf32> -> vector<8x1024xf32>
    %c1 = arith.constant 1 : index
    %c0_14 = arith.constant 0 : index
    %c0_15 = arith.constant 0 : index
    %18 = vector.load %arg4[%c1, %c0_14, %c0_15] : memref<2x8x1024xf32, #tpu.memory_space<vmem>>, vector<1x8x1024xf32>
    %19 = vector.shape_cast %18 : vector<1x8x1024xf32> to vector<8x1024xf32>
    %20 = vector.shape_cast %17 : vector<8x1024xf32> to vector<1x8x1024xf32>
    tpu.vector_store %arg4[%c1, %c0_14, %c0_15], %20 {strides = array<i32>} : memref<2x8x1024xf32, #tpu.memory_space<vmem>>, vector<1x8x1024xf32>,
    return
  }
  func.func @transform_0(%arg0: i32) -> (i32, i32, i32) {
    %c0_i32 = arith.constant 0 : i32
    %c0_i32_0 = arith.constant 0 : i32
    %c0_i32_1 = arith.constant 0 : i32
    return %arg0, %c0_i32, %c0_i32_0 : i32, i32, i32
  }
  func.func @transform_1(%arg0: i32) -> (i32, i32) {
    %c0_i32 = arith.constant 0 : i32
    %c0_i32_0 = arith.constant 0 : i32
    %c0_i32_1 = arith.constant 0 : i32
    return %c0_i32, %c0_i32_0 : i32, i32
  }
  func.func @transform_2(%arg0: i32) -> (i32, i32) {
    %c0_i32 = arith.constant 0 : i32
    %c0_i32_0 = arith.constant 0 : i32
    %c0_i32_1 = arith.constant 0 : i32
    return %c0_i32, %c0_i32_0 : i32, i32
  }
  func.func @transform_3(%arg0: i32) -> (i32, i32, i32) {
    %c0_i32 = arith.constant 0 : i32
    %c0_i32_0 = arith.constant 0 : i32
    %c0_i32_1 = arith.constant 0 : i32
    return %arg0, %c0_i32, %c0_i32_0 : i32, i32, i32
  }
}

</mosaic_0001>

<bundles_post_ra>
// kernel: transition_block.1
= control target key start
LH: loop header
LB: loop body
LE: loop exit
PB: predicated region body
PF: predicated region fallthrough
CT: control target
= control target key end

     0   :  { %vm615_vm0 = vcmask 1043456   ;;  %vm644_vm1 = vcmask 31744   ;;  %s2003_s2 = inlined_call_operand.vmem [shape: f32[256,1024], index: 2, kind: input, shape index: {}]   ;;  %s2004_s0 = inlined_call_operand.vmem [shape: f32[2,4,256], index: 0, kind: input, shape index: {}]   ;;  %s2005_s1 = inlined_call_operand.vmem [shape: f32[8,4], index: 1, kind: input, shape index: {}]   ;;  %s2006_s3 = inlined_call_operand.vmem [shape: f32[2,8,1024], index: 3, kind: output, shape index: {}]  }
   0x1   :  { %v139_v0 = vld [vmem:[%s2003_s2 + $0x3c8] sm:$0xff]  ;;  %v138_v6 = vld [vmem:[%s2003_s2 + $0x3c0] sm:$0xff]  ;;  %v141_v60 = vld [vmem:[%s2003_s2 + $0x3d8] sm:$0xff] }
   0x2   :  { %v267_v1 = vld [vmem:[%s2003_s2 + $0x7c8] sm:$0xff]  ;;  %323 = vmatpush.msra.mxu2 %v139_v0  ;;  %v266_v8 = vld [vmem:[%s2003_s2 + $0x7c0] sm:$0xff]  ;;  %283 = vmatpush.msra.mxu0 %v138_v6  ;;  %v269_v61 = vld [vmem:[%s2003_s2 + $0x7d8] sm:$0xff] }
   0x3   :  { %v131_v2 = vld [vmem:[%s2003_s2 + $0x388] sm:$0xff]  ;;  %343 = vmatpush.msra.mxu3 %v267_v1  ;;  %303 = vmatpush.msra.mxu1 %v266_v8  ;;  %v130_v10 = vld [vmem:[%s2003_s2 + $0x380] sm:$0xff]  ;;  %v133_v0 = vld [vmem:[%s2003_s2 + $0x398] sm:$0xff] }
   0x4   :  { %v259_v3 = vld [vmem:[%s2003_s2 + $0x788] sm:$0xff]  ;;  %324 = vmatpush.msra.mxu2 %v131_v2  ;;  %v258_v11 = vld [vmem:[%s2003_s2 + $0x780] sm:$0xff]  ;;  %284 = vmatpush.msra.mxu0 %v130_v10  ;;  %v261_v1 = vld [vmem:[%s2003_s2 + $0x798] sm:$0xff] }
   0x5   :  { %v123_v4 = vld [vmem:[%s2003_s2 + $0x348] sm:$0xff]  ;;  %344 = vmatpush.msra.mxu3 %v259_v3  ;;  %v122_v12 = vld [vmem:[%s2003_s2 + $0x340] sm:$0xff]  ;;  %304 = vmatpush.msra.mxu1 %v258_v11  ;;  %v140_v6 = vld [vmem:[%s2003_s2 + $0x3d0] sm:$0xff] }
   0x6   :  { %v251_v5 = vld [vmem:[%s2003_s2 + $0x748] sm:$0xff]  ;;  %325 = vmatpush.msra.mxu2 %v123_v4  ;;  %v250_v13 = vld [vmem:[%s2003_s2 + $0x740] sm:$0xff]  ;;  %285 = vmatpush.msra.mxu0 %v122_v12  ;;  %v125_v4 = vld [vmem:[%s2003_s2 + $0x358] sm:$0xff] }
   0x7   :  { %v115_v7 = vld [vmem:[%s2003_s2 + $0x308] sm:$0xff]  ;;  %345 = vmatpush.msra.mxu3 %v251_v5  ;;  %v114_v16 = vld [vmem:[%s2003_s2 + $0x300] sm:$0xff]  ;;  %305 = vmatpush.msra.mxu1 %v250_v13  ;;  %v253_v5 = vld [vmem:[%s2003_s2 + $0x758] sm:$0xff] }
   0x8   :  { %v243_v9 = vld [vmem:[%s2003_s2 + $0x708] sm:$0xff]  ;;  %326 = vmatpush.msra.mxu2 %v115_v7  ;;  %v242_v17 = vld [vmem:[%s2003_s2 + $0x700] sm:$0xff]  ;;  %286 = vmatpush.msra.mxu0 %v114_v16  ;;  %v268_v7 = vld [vmem:[%s2003_s2 + $0x7d0] sm:$0xff] }
   0x9   :  { %v107_v14 = vld [vmem:[%s2003_s2 + $0x2c8] sm:$0xff]  ;;  %346 = vmatpush.msra.mxu3 %v243_v9  ;;  %v106_v20 = vld [vmem:[%s2003_s2 + $0x2c0] sm:$0xff]  ;;  %306 = vmatpush.msra.mxu1 %v242_v17  ;;  %v117_v8 = vld [vmem:[%s2003_s2 + $0x318] sm:$0xff] }
   0xa   :  { %v235_v15 = vld [vmem:[%s2003_s2 + $0x6c8] sm:$0xff]  ;;  %327 = vmatpush.msra.mxu2 %v107_v14  ;;  %v234_v21 = vld [vmem:[%s2003_s2 + $0x6c0] sm:$0xff]  ;;  %287 = vmatpush.msra.mxu0 %v106_v20  ;;  %v245_v9 = vld [vmem:[%s2003_s2 + $0x718] sm:$0xff] }
   0xb   :  { %v99_v18 = vld [vmem:[%s2003_s2 + $0x288] sm:$0xff]  ;;  %347 = vmatpush.msra.mxu3 %v235_v15  ;;  %v98_v24 = vld [vmem:[%s2003_s2 + $0x280] sm:$0xff]  ;;  %307 = vmatpush.msra.mxu1 %v234_v21  ;;  %v132_v10 = vld [vmem:[%s2003_s2 + $0x390] sm:$0xff] }
   0xc   :  { %v227_v19 = vld [vmem:[%s2003_s2 + $0x688] sm:$0xff]  ;;  %328 = vmatpush.msra.mxu2 %v99_v18  ;;  %v226_v25 = vld [vmem:[%s2003_s2 + $0x680] sm:$0xff]  ;;  %288 = vmatpush.msra.mxu0 %v98_v24  ;;  %v260_v11 = vld [vmem:[%s2003_s2 + $0x790] sm:$0xff] }
   0xd   :  { %v91_v22 = vld [vmem:[%s2003_s2 + $0x248] sm:$0xff]  ;;  %348 = vmatpush.msra.mxu3 %v227_v19  ;;  %v90_v28 = vld [vmem:[%s2003_s2 + $0x240] sm:$0xff]  ;;  %308 = vmatpush.msra.mxu1 %v226_v25  ;;  %v109_v14 = vld [vmem:[%s2003_s2 + $0x2d8] sm:$0xff] }
   0xe   :  { %v219_v23 = vld [vmem:[%s2003_s2 + $0x648] sm:$0xff]  ;;  %329 = vmatpush.msra.mxu2 %v91_v22  ;;  %v218_v29 = vld [vmem:[%s2003_s2 + $0x640] sm:$0xff]  ;;  %289 = vmatpush.msra.mxu0 %v90_v28  ;;  %v237_v15 = vld [vmem:[%s2003_s2 + $0x6d8] sm:$0xff] }
   0xf   :  { %v83_v26 = vld [vmem:[%s2003_s2 + $0x208] sm:$0xff]  ;;  %349 = vmatpush.msra.mxu3 %v219_v23  ;;  %v82_v32 = vld [vmem:[%s2003_s2 + $0x200] sm:$0xff]  ;;  %309 = vmatpush.msra.mxu1 %v218_v29  ;;  %v124_v18 = vld [vmem:[%s2003_s2 + $0x350] sm:$0xff] }
  0x10   :  { %v211_v27 = vld [vmem:[%s2003_s2 + $0x608] sm:$0xff]  ;;  %330 = vmatpush.msra.mxu2 %v83_v26  ;;  %v210_v33 = vld [vmem:[%s2003_s2 + $0x600] sm:$0xff]  ;;  %290 = vmatpush.msra.mxu0 %v82_v32  ;;  %v252_v19 = vld [vmem:[%s2003_s2 + $0x750] sm:$0xff] }
  0x11   :  { %v75_v30 = vld [vmem:[%s2003_s2 + $0x1c8] sm:$0xff]  ;;  %350 = vmatpush.msra.mxu3 %v211_v27  ;;  %v74_v36 = vld [vmem:[%s2003_s2 + $0x1c0] sm:$0xff]  ;;  %310 = vmatpush.msra.mxu1 %v210_v33  ;;  %v101_v20 = vld [vmem:[%s2003_s2 + $0x298] sm:$0xff] }
  0x12   :  { %v203_v31 = vld [vmem:[%s2003_s2 + $0x5c8] sm:$0xff]  ;;  %331 = vmatpush.msra.mxu2 %v75_v30  ;;  %v202_v37 = vld [vmem:[%s2003_s2 + $0x5c0] sm:$0xff]  ;;  %291 = vmatpush.msra.mxu0 %v74_v36  ;;  %v229_v21 = vld [vmem:[%s2003_s2 + $0x698] sm:$0xff] }
  0x13   :  { %v67_v34 = vld [vmem:[%s2003_s2 + $0x188] sm:$0xff]  ;;  %351 = vmatpush.msra.mxu3 %v203_v31  ;;  %v66_v40 = vld [vmem:[%s2003_s2 + $0x180] sm:$0xff]  ;;  %311 = vmatpush.msra.mxu1 %v202_v37  ;;  %v116_v22 = vld [vmem:[%s2003_s2 + $0x310] sm:$0xff] }
  0x14   :  { %v195_v35 = vld [vmem:[%s2003_s2 + $0x588] sm:$0xff]  ;;  %332 = vmatpush.msra.mxu2 %v67_v34  ;;  %v194_v41 = vld [vmem:[%s2003_s2 + $0x580] sm:$0xff]  ;;  %292 = vmatpush.msra.mxu0 %v66_v40  ;;  %v244_v23 = vld [vmem:[%s2003_s2 + $0x710] sm:$0xff] }
  0x15   :  { %v59_v38 = vld [vmem:[%s2003_s2 + $0x148] sm:$0xff]  ;;  %352 = vmatpush.msra.mxu3 %v195_v35  ;;  %v58_v44 = vld [vmem:[%s2003_s2 + $0x140] sm:$0xff]  ;;  %312 = vmatpush.msra.mxu1 %v194_v41  ;;  %v93_v24 = vld [vmem:[%s2003_s2 + $0x258] sm:$0xff] }
  0x16   :  { %v187_v39 = vld [vmem:[%s2003_s2 + $0x548] sm:$0xff]  ;;  %333 = vmatpush.msra.mxu2 %v59_v38  ;;  %v186_v45 = vld [vmem:[%s2003_s2 + $0x540] sm:$0xff]  ;;  %293 = vmatpush.msra.mxu0 %v58_v44  ;;  %v221_v25 = vld [vmem:[%s2003_s2 + $0x658] sm:$0xff] }
  0x17   :  { %v51_v42 = vld [vmem:[%s2003_s2 + $0x108] sm:$0xff]  ;;  %353 = vmatpush.msra.mxu3 %v187_v39  ;;  %v50_v48 = vld [vmem:[%s2003_s2 + $0x100] sm:$0xff]  ;;  %313 = vmatpush.msra.mxu1 %v186_v45  ;;  %v108_v26 = vld [vmem:[%s2003_s2 + $0x2d0] sm:$0xff] }
  0x18   :  { %v179_v43 = vld [vmem:[%s2003_s2 + $0x508] sm:$0xff]  ;;  %334 = vmatpush.msra.mxu2 %v51_v42  ;;  %v178_v49 = vld [vmem:[%s2003_s2 + $0x500] sm:$0xff]  ;;  %294 = vmatpush.msra.mxu0 %v50_v48  ;;  %v236_v27 = vld [vmem:[%s2003_s2 + $0x6d0] sm:$0xff] }
  0x19   :  { %v43_v46 = vld [vmem:[%s2003_s2 + $0xc8] sm:$0xff]  ;;  %354 = vmatpush.msra.mxu3 %v179_v43  ;;  %v42_v52 = vld [vmem:[%s2003_s2 + $0xc0] sm:$0xff]  ;;  %314 = vmatpush.msra.mxu1 %v178_v49  ;;  %v85_v28 = vld [vmem:[%s2003_s2 + $0x218] sm:$0xff] }
  0x1a   :  { %v171_v47 = vld [vmem:[%s2003_s2 + $0x4c8] sm:$0xff]  ;;  %335 = vmatpush.msra.mxu2 %v43_v46  ;;  %v170_v53 = vld [vmem:[%s2003_s2 + $0x4c0] sm:$0xff]  ;;  %295 = vmatpush.msra.mxu0 %v42_v52  ;;  %v213_v29 = vld [vmem:[%s2003_s2 + $0x618] sm:$0xff] }
  0x1b   :  { %v35_v50 = vld [vmem:[%s2003_s2 + $0x88] sm:$0xff]  ;;  %355 = vmatpush.msra.mxu3 %v171_v47  ;;  %v34_v56 = vld [vmem:[%s2003_s2 + $0x80] sm:$0xff]  ;;  %315 = vmatpush.msra.mxu1 %v170_v53  ;;  %v100_v30 = vld [vmem:[%s2003_s2 + $0x290] sm:$0xff] }
  0x1c   :  { %v163_v51 = vld [vmem:[%s2003_s2 + $0x488] sm:$0xff]  ;;  %336 = vmatpush.msra.mxu2 %v35_v50  ;;  %v162_v57 = vld [vmem:[%s2003_s2 + $0x480] sm:$0xff]  ;;  %296 = vmatpush.msra.mxu0 %v34_v56  ;;  %v228_v31 = vld [vmem:[%s2003_s2 + $0x690] sm:$0xff] }
  0x1d   :  { %v27_v54 = vld [vmem:[%s2003_s2 + $0x48] sm:$0xff]  ;;  %356 = vmatpush.msra.mxu3 %v163_v51  ;;  %316 = vmatpush.msra.mxu1 %v162_v57  ;;  %v26_v62 = vld [vmem:[%s2003_s2 + $0x40] sm:$0xff]  ;;  %v77_v32 = vld [vmem:[%s2003_s2 + $0x1d8] sm:$0xff] }
  0x1e   :  { %v155_v55 = vld [vmem:[%s2003_s2 + $0x448] sm:$0xff]  ;;  %337 = vmatpush.msra.mxu2 %v27_v54  ;;  %v154_v63 = vld [vmem:[%s2003_s2 + $0x440] sm:$0xff]  ;;  %297 = vmatpush.msra.mxu0 %v26_v62  ;;  %v205_v33 = vld [vmem:[%s2003_s2 + $0x5d8] sm:$0xff] }
  0x1f   :  { %v19_v58 = vld [vmem:[%s2003_s2 + $0x8] sm:$0xff]  ;;  %357 = vmatpush.msra.mxu3 %v155_v55  ;;  %v18_v2 = vld [vmem:[%s2003_s2] sm:$0xff]  ;;  %317 = vmatpush.msra.mxu1 %v154_v63  ;;  %v92_v34 = vld [vmem:[%s2003_s2 + $0x250] sm:$0xff] }
  0x20   :  { %v147_v59 = vld [vmem:[%s2003_s2 + $0x408] sm:$0xff]  ;;  %338 = vmatpush.msra.mxu2 %v19_v58  ;;  %v146_v3 = vld [vmem:[%s2003_s2 + $0x400] sm:$0xff]  ;;  %298 = vmatpush.msra.mxu0 %v18_v2  ;;  %v220_v35 = vld [vmem:[%s2003_s2 + $0x650] sm:$0xff] }
  0x21   :  { %358 = vmatpush.msra.mxu3 %v147_v59  ;;  %318 = vmatpush.msra.mxu1 %v146_v3  ;;  %v14_v12 = vld [vmem:[%s2004_s0] sm:$0xff]  ;;  %v15_v13 = vld [vmem:[%s2004_s0 + $0x8] sm:$0xff]  ;;  %v69_v36 = vld [vmem:[%s2003_s2 + $0x198] sm:$0xff] }
  0x22   :  { %403 = vmatpush.msrb.mxu2 %v141_v60  ;;  %363 = vmatpush.msrb.mxu0 %v140_v6  ;;  %v16_v16 = vmax.f32 %v14_v12, 0.0  ;;  %v17_v17 = vmax.f32 %v15_v13, 0.0  ;;  %v197_v37 = vld [vmem:[%s2003_s2 + $0x598] sm:$0xff]  ;;  %v84_v38 = vld [vmem:[%s2003_s2 + $0x210] sm:$0xff]  ;;  %v143_v62 = vld [vmem:[%s2003_s2 + $0x3e8] sm:$0xff] }
  0x23   :  { %423 = vmatpush.msrb.mxu3 %v269_v61  ;;  %383 = vmatpush.msrb.mxu1 %v268_v7  ;;  %v212_v39 = vld [vmem:[%s2003_s2 + $0x610] sm:$0xff]  ;;  %v61_v40 = vld [vmem:[%s2003_s2 + $0x158] sm:$0xff]  ;;  %v271_v63 = vld [vmem:[%s2003_s2 + $0x7e8] sm:$0xff] }
  0x24   :  { %404 = vmatpush.msrb.mxu2 %v133_v0  ;;  %364 = vmatpush.msrb.mxu0 %v132_v10  ;;  %276 = vst [vmem:[#allocation1] ss:$2 sm:$0xff] %v16_v16  ;;  %v189_v41 = vld [vmem:[%s2003_s2 + $0x558] sm:$0xff]  ;;  %v76_v42 = vld [vmem:[%s2003_s2 + $0x1d0] sm:$0xff]  ;;  %v135_v2 = vld [vmem:[%s2003_s2 + $0x3a8] sm:$0xff] }
  0x25   :  { %424 = vmatpush.msrb.mxu3 %v261_v1  ;;  %384 = vmatpush.msrb.mxu1 %v260_v11  ;;  %278 = vst [vmem:[#allocation1 + $0x1] ss:$2 sm:$0xff] %v17_v17  ;;  %v204_v43 = vld [vmem:[%s2003_s2 + $0x5d0] sm:$0xff]  ;;  %v53_v44 = vld [vmem:[%s2003_s2 + $0x118] sm:$0xff]  ;;  %v263_v3 = vld [vmem:[%s2003_s2 + $0x7a8] sm:$0xff] }
  0x26   :  { %405 = vmatpush.msrb.mxu2 %v125_v4  ;;  %365 = vmatpush.msrb.mxu0 %v124_v18  ;;  %v181_v45 = vld [vmem:[%s2003_s2 + $0x518] sm:$0xff]  ;;  %v68_v50 = vld [vmem:[%s2003_s2 + $0x190] sm:$0xff]  ;;  %v127_v6 = vld [vmem:[%s2003_s2 + $0x368] sm:$0xff] }
  0x27   :  { %425 = vmatpush.msrb.mxu3 %v253_v5  ;;  %385 = vmatpush.msrb.mxu1 %v252_v19  ;;  %v45_v48 = vld [vmem:[%s2003_s2 + $0xd8] sm:$0xff]  ;;  %v196_v51 = vld [vmem:[%s2003_s2 + $0x590] sm:$0xff]  ;;  %v255_v7 = vld [vmem:[%s2003_s2 + $0x768] sm:$0xff] }
  0x28   :  { %406 = vmatpush.msrb.mxu2 %v117_v8  ;;  %366 = vmatpush.msrb.mxu0 %v116_v22  ;;  %v173_v49 = vld [vmem:[%s2003_s2 + $0x4d8] sm:$0xff]  ;;  %v60_v54 = vld [vmem:[%s2003_s2 + $0x150] sm:$0xff]  ;;  %v119_v10 = vld [vmem:[%s2003_s2 + $0x328] sm:$0xff] }
  0x29   :  { %426 = vmatpush.msrb.mxu3 %v245_v9  ;;  %386 = vmatpush.msrb.mxu1 %v244_v23  ;;  %v37_v52 = vld [vmem:[%s2003_s2 + $0x98] sm:$0xff]  ;;  %v188_v55 = vld [vmem:[%s2003_s2 + $0x550] sm:$0xff]  ;;  %v247_v11 = vld [vmem:[%s2003_s2 + $0x728] sm:$0xff] }
  0x2a   :  { %407 = vmatpush.msrb.mxu2 %v109_v14  ;;  %367 = vmatpush.msrb.mxu0 %v108_v26  ;;  %v165_v53 = vld [vmem:[%s2003_s2 + $0x498] sm:$0xff]  ;;  %v52_v58 = vld [vmem:[%s2003_s2 + $0x110] sm:$0xff]  ;;  %v142_v14 = vld [vmem:[%s2003_s2 + $0x3e0] sm:$0xff] }
  0x2b   :  { %427 = vmatpush.msrb.mxu3 %v237_v15  ;;  %387 = vmatpush.msrb.mxu1 %v236_v27  ;;  %v29_v56 = vld [vmem:[%s2003_s2 + $0x58] sm:$0xff]  ;;  %v180_v59 = vld [vmem:[%s2003_s2 + $0x510] sm:$0xff]  ;;  %v270_v15 = vld [vmem:[%s2003_s2 + $0x7e0] sm:$0xff] }
  0x2c   :  { %408 = vmatpush.msrb.mxu2 %v101_v20  ;;  %368 = vmatpush.msrb.mxu0 %v100_v30  ;;  %v1424_v46 = vld.sshfl [vmem:[#allocation1] sm:$0xff pattern:$0x75316420]  ;;  %v1426_v47 = vld.sshfl [vmem:[#allocation1 + $0x8] sm:$0xff pattern:$0x75316420] }
  0x2d   :  { %428 = vmatpush.msrb.mxu3 %v229_v21  ;;  %388 = vmatpush.msrb.mxu1 %v228_v31  ;;  %v157_v57 = vld [vmem:[%s2003_s2 + $0x458] sm:$0xff]  ;;  %v44_v0 = vld [vmem:[%s2003_s2 + $0xd0] sm:$0xff]  ;;  %v111_v16 = vld [vmem:[%s2003_s2 + $0x2e8] sm:$0xff] }
  0x2e   :  { %409 = vmatpush.msrb.mxu2 %v93_v24  ;;  %369 = vmatpush.msrb.mxu0 %v92_v34  ;;  %v21_v60 = vld [vmem:[%s2003_s2 + $0x18] sm:$0xff]  ;;  %v172_v1 = vld [vmem:[%s2003_s2 + $0x4d0] sm:$0xff]  ;;  %v239_v17 = vld [vmem:[%s2003_s2 + $0x6e8] sm:$0xff] }
  0x2f   :  { %429 = vmatpush.msrb.mxu3 %v221_v25  ;;  %389 = vmatpush.msrb.mxu1 %v220_v35  ;;  %v149_v61 = vld [vmem:[%s2003_s2 + $0x418] sm:$0xff]  ;;  %v36_v4 = vld [vmem:[%s2003_s2 + $0x90] sm:$0xff]  ;;  %v134_v18 = vld [vmem:[%s2003_s2 + $0x3a0] sm:$0xff] }
  0x30   :  { %410 = vmatpush.msrb.mxu2 %v85_v28  ;;  %370 = vmatpush.msrb.mxu0 %v84_v38  ;;  %v164_v5 = vld [vmem:[%s2003_s2 + $0x490] sm:$0xff]  ;;  %v262_v19 = vld [vmem:[%s2003_s2 + $0x7a0] sm:$0xff]  ;;  %v103_v20 = vld [vmem:[%s2003_s2 + $0x2a8] sm:$0xff] }
  0x31   :  { %430 = vmatpush.msrb.mxu3 %v213_v29  ;;  %390 = vmatpush.msrb.mxu1 %v212_v39  ;;  %v28_v8 = vld [vmem:[%s2003_s2 + $0x50] sm:$0xff]  ;;  %v231_v21 = vld [vmem:[%s2003_s2 + $0x6a8] sm:$0xff]  ;;  %v126_v22 = vld [vmem:[%s2003_s2 + $0x360] sm:$0xff] }
  0x32   :  { %411 = vmatpush.msrb.mxu2 %v77_v32  ;;  %371 = vmatpush.msrb.mxu0 %v76_v42  ;;  %v156_v9 = vld [vmem:[%s2003_s2 + $0x450] sm:$0xff]  ;;  %v254_v23 = vld [vmem:[%s2003_s2 + $0x760] sm:$0xff]  ;;  %v95_v24 = vld [vmem:[%s2003_s2 + $0x268] sm:$0xff] }
  0x33   :  { %431 = vmatpush.msrb.mxu3 %v205_v33  ;;  %391 = vmatpush.msrb.mxu1 %v204_v43  ;;  %v20_v12 = vld [vmem:[%s2003_s2 + $0x10] sm:$0xff]  ;;  %v223_v25 = vld [vmem:[%s2003_s2 + $0x668] sm:$0xff]  ;;  %v118_v26 = vld [vmem:[%s2003_s2 + $0x320] sm:$0xff] }
  0x34   :  { %412 = vmatpush.msrb.mxu2 %v69_v36  ;;  %359 = vmatmul.f32.vlgmr.msra.gmra.mxu3 %v1426_v47  ;;  %v148_v13 = vld [vmem:[%s2003_s2 + $0x410] sm:$0xff]  ;;  %v246_v27 = vld [vmem:[%s2003_s2 + $0x720] sm:$0xff]  ;;  %v87_v28 = vld [vmem:[%s2003_s2 + $0x228] sm:$0xff] }
  0x35   :  { %432 = vmatpush.msrb.mxu3 %v197_v37  ;;  %339 = vmatmul.f32.vlgmr.msra.gmra.mxu2 %v1424_v46  ;;  %v215_v29 = vld [vmem:[%s2003_s2 + $0x628] sm:$0xff]  ;;  %v110_v30 = vld [vmem:[%s2003_s2 + $0x2e0] sm:$0xff] }
  0x36   :  { %413 = vmatpush.msrb.mxu2 %v61_v40  ;;  %372 = vmatpush.msrb.mxu0 %v68_v50  ;;  %v238_v31 = vld [vmem:[%s2003_s2 + $0x6e0] sm:$0xff]  ;;  %v79_v32 = vld [vmem:[%s2003_s2 + $0x1e8] sm:$0xff] }
  0x37   :  { %433 = vmatpush.msrb.mxu3 %v189_v41  ;;  %392 = vmatpush.msrb.mxu1 %v196_v51  ;;  %v207_v33 = vld [vmem:[%s2003_s2 + $0x5e8] sm:$0xff]  ;;  %v102_v34 = vld [vmem:[%s2003_s2 + $0x2a0] sm:$0xff] }
  0x38   :  { %414 = vmatpush.msrb.mxu2 %v53_v44  ;;  %373 = vmatpush.msrb.mxu0 %v60_v54  ;;  %v230_v35 = vld [vmem:[%s2003_s2 + $0x6a0] sm:$0xff]  ;;  %v71_v36 = vld [vmem:[%s2003_s2 + $0x1a8] sm:$0xff] }
  0x39   :  { %434 = vmatpush.msrb.mxu3 %v181_v45  ;;  %393 = vmatpush.msrb.mxu1 %v188_v55  ;;  %v199_v37 = vld [vmem:[%s2003_s2 + $0x5a8] sm:$0xff]  ;;  %v94_v38 = vld [vmem:[%s2003_s2 + $0x260] sm:$0xff] }
  0x3a   :  { %415 = vmatpush.msrb.mxu2 %v45_v48  ;;  %374 = vmatpush.msrb.mxu0 %v52_v58  ;;  %v222_v39 = vld [vmem:[%s2003_s2 + $0x660] sm:$0xff]  ;;  %v63_v40 = vld [vmem:[%s2003_s2 + $0x168] sm:$0xff] }
  0x3b   :  { %435 = vmatpush.msrb.mxu3 %v173_v49  ;;  %394 = vmatpush.msrb.mxu1 %v180_v59  ;;  %v191_v41 = vld [vmem:[%s2003_s2 + $0x568] sm:$0xff]  ;;  %v86_v42 = vld [vmem:[%s2003_s2 + $0x220] sm:$0xff] }
  0x3c   :  { %416 = vmatpush.msrb.mxu2 %v37_v52  ;;  %375 = vmatpush.msrb.mxu0 %v44_v0  ;;  %v214_v43 = vld [vmem:[%s2003_s2 + $0x620] sm:$0xff]  ;;  %v55_v44 = vld [vmem:[%s2003_s2 + $0x128] sm:$0xff]  ;;  %v145_v0 = vld [vmem:[%s2003_s2 + $0x3f8] sm:$0xff] }
  0x3d   :  { %436 = vmatpush.msrb.mxu3 %v165_v53  ;;  %395 = vmatpush.msrb.mxu1 %v172_v1  ;;  %v183_v45 = vld [vmem:[%s2003_s2 + $0x528] sm:$0xff]  ;;  %v78_v48 = vld [vmem:[%s2003_s2 + $0x1e0] sm:$0xff]  ;;  %v273_v1 = vld [vmem:[%s2003_s2 + $0x7f8] sm:$0xff] }
  0x3e   :  { %417 = vmatpush.msrb.mxu2 %v29_v56  ;;  %299 = vmatmul.f32.vlgmr.msra.gmra.mxu0 %v1424_v46  ;;  %v206_v49 = vld [vmem:[%s2003_s2 + $0x5e0] sm:$0xff]  ;;  %v47_v50 = vld [vmem:[%s2003_s2 + $0xe8] sm:$0xff] }
  0x3f   :  { %437 = vmatpush.msrb.mxu3 %v157_v57  ;;  %319 = vmatmul.f32.vlgmr.msra.gmra.mxu1 %v1426_v47  ;;  %v175_v51 = vld [vmem:[%s2003_s2 + $0x4e8] sm:$0xff]  ;;  %v70_v52 = vld [vmem:[%s2003_s2 + $0x1a0] sm:$0xff] }
  0x40   :  { %418 = vmatpush.msrb.mxu2 %v21_v60  ;;  %376 = vmatpush.msrb.mxu0 %v36_v4  ;;  %v198_v53 = vld [vmem:[%s2003_s2 + $0x5a0] sm:$0xff]  ;;  %v39_v54 = vld [vmem:[%s2003_s2 + $0xa8] sm:$0xff]  ;;  %v137_v4 = vld [vmem:[%s2003_s2 + $0x3b8] sm:$0xff] }
  0x41   :  { %438 = vmatpush.msrb.mxu3 %v149_v61  ;;  %396 = vmatpush.msrb.mxu1 %v164_v5  ;;  %v167_v55 = vld [vmem:[%s2003_s2 + $0x4a8] sm:$0xff]  ;;  %v62_v56 = vld [vmem:[%s2003_s2 + $0x160] sm:$0xff]  ;;  %v265_v5 = vld [vmem:[%s2003_s2 + $0x7b8] sm:$0xff] }
  0x42   :  { %483 = vmatpush.msra.mxu2 %v143_v62  ;;  %377 = vmatpush.msrb.mxu0 %v28_v8  ;;  %v190_v57 = vld [vmem:[%s2003_s2 + $0x560] sm:$0xff]  ;;  %v31_v58 = vld [vmem:[%s2003_s2 + $0x68] sm:$0xff]  ;;  %v129_v8 = vld [vmem:[%s2003_s2 + $0x378] sm:$0xff] }
  0x43   :  { %503 = vmatpush.msra.mxu3 %v271_v63  ;;  %397 = vmatpush.msrb.mxu1 %v156_v9  ;;  %v159_v59 = vld [vmem:[%s2003_s2 + $0x468] sm:$0xff]  ;;  %v54_v60 = vld [vmem:[%s2003_s2 + $0x120] sm:$0xff]  ;;  %v257_v9 = vld [vmem:[%s2003_s2 + $0x778] sm:$0xff] }
  0x44   :  { %484 = vmatpush.msra.mxu2 %v135_v2  ;;  %378 = vmatpush.msrb.mxu0 %v20_v12  ;;  %v182_v61 = vld [vmem:[%s2003_s2 + $0x520] sm:$0xff]  ;;  %v23_v62 = vld [vmem:[%s2003_s2 + $0x28] sm:$0xff]  ;;  %v121_v12 = vld [vmem:[%s2003_s2 + $0x338] sm:$0xff] }
  0x45   :  { %504 = vmatpush.msra.mxu3 %v263_v3  ;;  %398 = vmatpush.msrb.mxu1 %v148_v13  ;;  %v151_v63 = vld [vmem:[%s2003_s2 + $0x428] sm:$0xff]  ;;  %v46_v2 = vld [vmem:[%s2003_s2 + $0xe0] sm:$0xff]  ;;  %v249_v13 = vld [vmem:[%s2003_s2 + $0x738] sm:$0xff] }
  0x46   :  { %485 = vmatpush.msra.mxu2 %v127_v6  ;;  %443 = vmatpush.msra.mxu0 %v142_v14  ;;  %v174_v3 = vld [vmem:[%s2003_s2 + $0x4e0] sm:$0xff] }
  0x47   :  { %505 = vmatpush.msra.mxu3 %v255_v7  ;;  %463 = vmatpush.msra.mxu1 %v270_v15  ;;  %v38_v6 = vld [vmem:[%s2003_s2 + $0xa0] sm:$0xff] }
  0x48   :  { %486 = vmatpush.msra.mxu2 %v119_v10  ;;  %444 = vmatpush.msra.mxu0 %v134_v18  ;;  %v166_v7 = vld [vmem:[%s2003_s2 + $0x4a0] sm:$0xff]  ;;  %v113_v18 = vld [vmem:[%s2003_s2 + $0x2f8] sm:$0xff] }
  0x49   :  { %506 = vmatpush.msra.mxu3 %v247_v11  ;;  %464 = vmatpush.msra.mxu1 %v262_v19  ;;  %v30_v10 = vld [vmem:[%s2003_s2 + $0x60] sm:$0xff]  ;;  %v241_v19 = vld [vmem:[%s2003_s2 + $0x6f8] sm:$0xff] }
  0x4a   :  { %487 = vmatpush.msra.mxu2 %v111_v16  ;;  %445 = vmatpush.msra.mxu0 %v126_v22  ;;  %v158_v11 = vld [vmem:[%s2003_s2 + $0x460] sm:$0xff]  ;;  %v144_v16 = vld [vmem:[%s2003_s2 + $0x3f0] sm:$0xff]  ;;  %v105_v22 = vld [vmem:[%s2003_s2 + $0x2b8] sm:$0xff] }
  0x4b   :  { %507 = vmatpush.msra.mxu3 %v239_v17  ;;  %465 = vmatpush.msra.mxu1 %v254_v23  ;;  %v22_v14 = vld [vmem:[%s2003_s2 + $0x20] sm:$0xff]  ;;  %v272_v17 = vld [vmem:[%s2003_s2 + $0x7f0] sm:$0xff]  ;;  %v233_v23 = vld [vmem:[%s2003_s2 + $0x6b8] sm:$0xff] }
  0x4c   :  { %488 = vmatpush.msra.mxu2 %v103_v20  ;;  %446 = vmatpush.msra.mxu0 %v118_v26  ;;  %v150_v15 = vld [vmem:[%s2003_s2 + $0x420] sm:$0xff]  ;;  %v136_v20 = vld [vmem:[%s2003_s2 + $0x3b0] sm:$0xff]  ;;  %v97_v26 = vld [vmem:[%s2003_s2 + $0x278] sm:$0xff] }
  0x4d   :  { %508 = vmatpush.msra.mxu3 %v231_v21  ;;  %466 = vmatpush.msra.mxu1 %v246_v27  ;;  %v264_v21 = vld [vmem:[%s2003_s2 + $0x7b0] sm:$0xff]  ;;  %v225_v27 = vld [vmem:[%s2003_s2 + $0x678] sm:$0xff] }
  0x4e   :  { %489 = vmatpush.msra.mxu2 %v95_v24  ;;  %447 = vmatpush.msra.mxu0 %v110_v30  ;;  %v128_v24 = vld [vmem:[%s2003_s2 + $0x370] sm:$0xff]  ;;  %v89_v30 = vld [vmem:[%s2003_s2 + $0x238] sm:$0xff] }
  0x4f   :  { %509 = vmatpush.msra.mxu3 %v223_v25  ;;  %467 = vmatpush.msra.mxu1 %v238_v31  ;;  %v256_v25 = vld [vmem:[%s2003_s2 + $0x770] sm:$0xff]  ;;  %v217_v31 = vld [vmem:[%s2003_s2 + $0x638] sm:$0xff] }
  0x50   :  { %490 = vmatpush.msra.mxu2 %v87_v28  ;;  %448 = vmatpush.msra.mxu0 %v102_v34  ;;  %v120_v28 = vld [vmem:[%s2003_s2 + $0x330] sm:$0xff]  ;;  %v81_v34 = vld [vmem:[%s2003_s2 + $0x1f8] sm:$0xff] }
  0x51   :  { %510 = vmatpush.msra.mxu3 %v215_v29  ;;  %468 = vmatpush.msra.mxu1 %v230_v35  ;;  %v248_v29 = vld [vmem:[%s2003_s2 + $0x730] sm:$0xff]  ;;  %v209_v35 = vld [vmem:[%s2003_s2 + $0x5f8] sm:$0xff] }
  0x52   :  { %491 = vmatpush.msra.mxu2 %v79_v32  ;;  %449 = vmatpush.msra.mxu0 %v94_v38  ;;  %v112_v32 = vld [vmem:[%s2003_s2 + $0x2f0] sm:$0xff]  ;;  %v73_v38 = vld [vmem:[%s2003_s2 + $0x1b8] sm:$0xff] }
  0x53   :  { %511 = vmatpush.msra.mxu3 %v207_v33  ;;  %469 = vmatpush.msra.mxu1 %v222_v39  ;;  %v240_v33 = vld [vmem:[%s2003_s2 + $0x6f0] sm:$0xff]  ;;  %v201_v39 = vld [vmem:[%s2003_s2 + $0x5b8] sm:$0xff] }
  0x54   :  { %492 = vmatpush.msra.mxu2 %v71_v36  ;;  %450 = vmatpush.msra.mxu0 %v86_v42  ;;  %v104_v36 = vld [vmem:[%s2003_s2 + $0x2b0] sm:$0xff]  ;;  %v65_v42 = vld [vmem:[%s2003_s2 + $0x178] sm:$0xff] }
  0x55   :  { %512 = vmatpush.msra.mxu3 %v199_v37  ;;  %470 = vmatpush.msra.mxu1 %v214_v43  ;;  %v232_v37 = vld [vmem:[%s2003_s2 + $0x6b0] sm:$0xff]  ;;  %v193_v43 = vld [vmem:[%s2003_s2 + $0x578] sm:$0xff] }
  0x56   :  { %493 = vmatpush.msra.mxu2 %v63_v40  ;;  %439 = vmatmul.f32.vlgmr.msrb.gmra.mxu3 %v1426_v47  ;;  %v96_v40 = vld [vmem:[%s2003_s2 + $0x270] sm:$0xff] }
  0x57   :  { %513 = vmatpush.msra.mxu3 %v191_v41  ;;  %419 = vmatmul.f32.vlgmr.msrb.gmra.mxu2 %v1424_v46  ;;  %v224_v41 = vld [vmem:[%s2003_s2 + $0x670] sm:$0xff] }
  0x58   :  { %494 = vmatpush.msra.mxu2 %v55_v44  ;;  %451 = vmatpush.msra.mxu0 %v78_v48  ;;  %v88_v44 = vld [vmem:[%s2003_s2 + $0x230] sm:$0xff]  ;;  %v57_v48 = vld [vmem:[%s2003_s2 + $0x138] sm:$0xff] }
  0x59   :  { %514 = vmatpush.msra.mxu3 %v183_v45  ;;  %471 = vmatpush.msra.mxu1 %v206_v49  ;;  %v216_v45 = vld [vmem:[%s2003_s2 + $0x630] sm:$0xff]  ;;  %v185_v49 = vld [vmem:[%s2003_s2 + $0x538] sm:$0xff] }
  0x5a   :  { %495 = vmatpush.msra.mxu2 %v47_v50  ;;  %452 = vmatpush.msra.mxu0 %v70_v52  ;;  %v80_v50 = vld [vmem:[%s2003_s2 + $0x1f0] sm:$0xff]  ;;  %v49_v52 = vld [vmem:[%s2003_s2 + $0xf8] sm:$0xff] }
  0x5b   :  { %515 = vmatpush.msra.mxu3 %v175_v51  ;;  %472 = vmatpush.msra.mxu1 %v198_v53  ;;  %v208_v51 = vld [vmem:[%s2003_s2 + $0x5f0] sm:$0xff]  ;;  %v177_v53 = vld [vmem:[%s2003_s2 + $0x4f8] sm:$0xff] }
  0x5c   :  { %496 = vmatpush.msra.mxu2 %v39_v54  ;;  %453 = vmatpush.msra.mxu0 %v62_v56  ;;  %v72_v54 = vld [vmem:[%s2003_s2 + $0x1b0] sm:$0xff]  ;;  %v41_v56 = vld [vmem:[%s2003_s2 + $0xb8] sm:$0xff] }
  0x5d   :  { %516 = vmatpush.msra.mxu3 %v167_v55  ;;  %473 = vmatpush.msra.mxu1 %v190_v57  ;;  %v200_v55 = vld [vmem:[%s2003_s2 + $0x5b0] sm:$0xff]  ;;  %v169_v57 = vld [vmem:[%s2003_s2 + $0x4b8] sm:$0xff] }
  0x5e   :  { %497 = vmatpush.msra.mxu2 %v31_v58  ;;  %454 = vmatpush.msra.mxu0 %v54_v60  ;;  %v64_v58 = vld [vmem:[%s2003_s2 + $0x170] sm:$0xff]  ;;  %v33_v60 = vld [vmem:[%s2003_s2 + $0x78] sm:$0xff] }
  0x5f   :  { %517 = vmatpush.msra.mxu3 %v159_v59  ;;  %474 = vmatpush.msra.mxu1 %v182_v61  ;;  %v192_v59 = vld [vmem:[%s2003_s2 + $0x570] sm:$0xff]  ;;  %v161_v61 = vld [vmem:[%s2003_s2 + $0x478] sm:$0xff] }
  0x60   :  { %498 = vmatpush.msra.mxu2 %v23_v62  ;;  %379 = vmatmul.f32.vlgmr.msrb.gmra.mxu0 %v1424_v46  ;;  %v56_v62 = vld [vmem:[%s2003_s2 + $0x130] sm:$0xff] }
  0x61   :  { %518 = vmatpush.msra.mxu3 %v151_v63  ;;  %399 = vmatmul.f32.vlgmr.msrb.gmra.mxu1 %v1426_v47  ;;  %v184_v63 = vld [vmem:[%s2003_s2 + $0x530] sm:$0xff] }
  0x62   :  { %499 = vmatmul.f32.vlgmr.msra.gmra.mxu2 %v1424_v46  ;;  %519 = vmatmul.f32.vlgmr.msra.gmra.mxu3 %v1426_v47 }
  0x63   :  { %563 = vmatpush.msrb.mxu2 %v145_v0  ;;  %583 = vmatpush.msrb.mxu3 %v273_v1  ;;  %v25_v0 = vld [vmem:[%s2003_s2 + $0x38] sm:$0xff] }
  0x64   :  { %455 = vmatpush.msra.mxu0 %v46_v2  ;;  %475 = vmatpush.msra.mxu1 %v174_v3  ;;  %v153_v1 = vld [vmem:[%s2003_s2 + $0x438] sm:$0xff]  ;;  %v48_v2 = vld [vmem:[%s2003_s2 + $0xf0] sm:$0xff] }
  0x65   :  { %564 = vmatpush.msrb.mxu2 %v137_v4  ;;  %584 = vmatpush.msrb.mxu3 %v265_v5  ;;  %v176_v3 = vld [vmem:[%s2003_s2 + $0x4f0] sm:$0xff] }
  0x66   :  { %456 = vmatpush.msra.mxu0 %v38_v6  ;;  %476 = vmatpush.msra.mxu1 %v166_v7  ;;  %v40_v4 = vld [vmem:[%s2003_s2 + $0xb0] sm:$0xff] }
  0x67   :  { %565 = vmatpush.msrb.mxu2 %v129_v8  ;;  %585 = vmatpush.msrb.mxu3 %v257_v9  ;;  %v168_v5 = vld [vmem:[%s2003_s2 + $0x4b0] sm:$0xff] }
  0x68   :  { %457 = vmatpush.msra.mxu0 %v30_v10  ;;  %477 = vmatpush.msra.mxu1 %v158_v11  ;;  %v32_v6 = vld [vmem:[%s2003_s2 + $0x70] sm:$0xff] }
  0x69   :  { %566 = vmatpush.msrb.mxu2 %v121_v12  ;;  %586 = vmatpush.msrb.mxu3 %v249_v13  ;;  %v160_v7 = vld [vmem:[%s2003_s2 + $0x470] sm:$0xff] }
  0x6a   :  { %458 = vmatpush.msra.mxu0 %v22_v14  ;;  %478 = vmatpush.msra.mxu1 %v150_v15  ;;  %v24_v8 = vld [vmem:[%s2003_s2 + $0x30] sm:$0xff] }
  0x6b   :  { %459 = vmatmul.f32.vlgmr.msra.gmra.mxu0 %v1424_v46  ;;  %479 = vmatmul.f32.vlgmr.msra.gmra.mxu1 %v1426_v47  ;;  %v152_v9 = vld [vmem:[%s2003_s2 + $0x430] sm:$0xff] }
  0x6c   :  { %523 = vmatpush.msrb.mxu0 %v144_v16  ;;  %543 = vmatpush.msrb.mxu1 %v272_v17 }
  0x6d   :  { %567 = vmatpush.msrb.mxu2 %v113_v18  ;;  %587 = vmatpush.msrb.mxu3 %v241_v19 }
  0x6e   :  { %524 = vmatpush.msrb.mxu0 %v136_v20  ;;  %544 = vmatpush.msrb.mxu1 %v264_v21 }
  0x6f   :  { %568 = vmatpush.msrb.mxu2 %v105_v22  ;;  %588 = vmatpush.msrb.mxu3 %v233_v23 }
  0x70   :  { %525 = vmatpush.msrb.mxu0 %v128_v24  ;;  %545 = vmatpush.msrb.mxu1 %v256_v25 }
  0x71   :  { %569 = vmatpush.msrb.mxu2 %v97_v26  ;;  %589 = vmatpush.msrb.mxu3 %v225_v27 }
  0x72   :  { %526 = vmatpush.msrb.mxu0 %v120_v28  ;;  %546 = vmatpush.msrb.mxu1 %v248_v29 }
  0x73   :  { %570 = vmatpush.msrb.mxu2 %v89_v30  ;;  %590 = vmatpush.msrb.mxu3 %v217_v31 }
  0x74   :  { %527 = vmatpush.msrb.mxu0 %v112_v32  ;;  %547 = vmatpush.msrb.mxu1 %v240_v33 }
  0x75   :  { %571 = vmatpush.msrb.mxu2 %v81_v34  ;;  %591 = vmatpush.msrb.mxu3 %v209_v35 }
  0x76   :  { %528 = vmatpush.msrb.mxu0 %v104_v36  ;;  %548 = vmatpush.msrb.mxu1 %v232_v37 }
  0x77   :  { %572 = vmatpush.msrb.mxu2 %v73_v38  ;;  %592 = vmatpush.msrb.mxu3 %v201_v39 }
  0x78   :  { %529 = vmatpush.msrb.mxu0 %v96_v40  ;;  %549 = vmatpush.msrb.mxu1 %v224_v41 }
  0x79   :  { %573 = vmatpush.msrb.mxu2 %v65_v42  ;;  %593 = vmatpush.msrb.mxu3 %v193_v43 }
  0x7a   :  { %530 = vmatpush.msrb.mxu0 %v88_v44  ;;  %550 = vmatpush.msrb.mxu1 %v216_v45 }
  0x7b   :  { %574 = vmatpush.msrb.mxu2 %v57_v48  ;;  %594 = vmatpush.msrb.mxu3 %v185_v49 }
  0x7c   :  { %531 = vmatpush.msrb.mxu0 %v80_v50  ;;  %551 = vmatpush.msrb.mxu1 %v208_v51 }
  0x7d   :  { %575 = vmatpush.msrb.mxu2 %v49_v52  ;;  %595 = vmatpush.msrb.mxu3 %v177_v53 }
  0x7e   :  { %532 = vmatpush.msrb.mxu0 %v72_v54  ;;  %552 = vmatpush.msrb.mxu1 %v200_v55 }
  0x7f   :  { %576 = vmatpush.msrb.mxu2 %v41_v56  ;;  %596 = vmatpush.msrb.mxu3 %v169_v57 }
  0x80   :  { %533 = vmatpush.msrb.mxu0 %v64_v58  ;;  %553 = vmatpush.msrb.mxu1 %v192_v59 }
  0x81   :  { %577 = vmatpush.msrb.mxu2 %v33_v60  ;;  %597 = vmatpush.msrb.mxu3 %v161_v61 }
  0x82   :  { %534 = vmatpush.msrb.mxu0 %v56_v62  ;;  %554 = vmatpush.msrb.mxu1 %v184_v63 }
  0x83   :  { %578 = vmatpush.msrb.mxu2 %v25_v0  ;;  %598 = vmatpush.msrb.mxu3 %v153_v1 }
  0x84   :  { %579 = vmatmul.f32.vlgmr.msrb.gmra.mxu2 %v1424_v46  ;;  %599 = vmatmul.f32.vlgmr.msrb.gmra.mxu3 %v1426_v47 }
  0x85   :  { %535 = vmatpush.msrb.mxu0 %v48_v2  ;;  %555 = vmatpush.msrb.mxu1 %v176_v3 }
  0x87   :  { %536 = vmatpush.msrb.mxu0 %v40_v4  ;;  %556 = vmatpush.msrb.mxu1 %v168_v5 }
  0x89   :  { %537 = vmatpush.msrb.mxu0 %v32_v6  ;;  %557 = vmatpush.msrb.mxu1 %v160_v7 }
  0x8b   :  { %538 = vmatpush.msrb.mxu0 %v24_v8  ;;  %558 = vmatpush.msrb.mxu1 %v152_v9 }
  0x8c   :  { %539 = vmatmul.f32.vlgmr.msrb.gmra.mxu0 %v1424_v46  ;;  %559 = vmatmul.f32.vlgmr.msrb.gmra.mxu1 %v1426_v47  ;;  %v1901_v46 = vld [vmem:[%s2005_s1] sm:$0xff] }
  0xb7   :  { %v360_v11 = vpop.f32.mrf.mxu3 }
  0xb8   :  { %v340_v10 = vpop.f32.mrf.mxu2 }
  0xb9   :  { %v361_v12 = vadd.f32 %v360_v11, %v340_v10 }
  0xbb   :  { %v611_v13 = vrot.slane %v361_v12, 4  ;;  %v300_v14 = vpop.f32.mrf.mxu0 }
  0xbc   :  { %v320_v15 = vpop.f32.mrf.mxu1 }
  0xbd   :  { %v321_v16 = vadd.f32 %v320_v15, %v300_v14 }
  0xbf   :  { %v616_v17 = vsel %vm615_vm0, %v321_v16, %v611_v13  ;;  %v620_v18 = vsel %vm615_vm0, %v611_v13, %v321_v16 }
  0xc0   :  { %629 = vst [vmem:[#allocation1] ss:$2 sm:$0xff] %v616_v17  ;;  %v621_v19 = vrot.slane %v620_v18, 4 }
  0xc7   :  { %v636_v20 = vld.sshfl [vmem:[#allocation1] sm:$0xff pattern:$0x75316420]  ;;  %v637_v21 = vld.sshfl [vmem:[#allocation1 + $0x8] sm:$0xff pattern:$0x75316420] }
  0xc8   :  { %1040 = vmatpush.msk.msra.mxu0 %vm615_vm0, %v636_v20  ;;  %1042 = vmatpush.msk.msra.mxu1 %vm615_vm0, %v637_v21  ;;  %833 = vst [vmem:[#allocation1] ss:$2 sm:$0xff] %v621_v19 }
  0xc9   :  { %1041 = vmatmul.msk.f32.vlgmr.msra.gmra.mxu0 %vm644_vm1, %v1901_v46  ;;  %1043 = vmatmul.msk.f32.vlgmr.msra.gmra.mxu1 %vm644_vm1, %v1901_v46 }
  0xcf   :  { %v840_v43 = vld.sshfl [vmem:[#allocation1] sm:$0xff pattern:$0x75316420]  ;;  %v841_v48 = vld.sshfl [vmem:[#allocation1 + $0x8] sm:$0xff pattern:$0x75316420] }
  0xd9   :  { %v440_v22 = vpop.f32.mrf.mxu3 }
  0xda   :  { %v420_v47 = vpop.f32.mrf.mxu2 }
  0xdb   :  { %v441_v23 = vadd.f32 %v440_v22, %v420_v47 }
  0xdd   :  { %v612_v24 = vrot.slane %v441_v23, 4  ;;  %v380_v25 = vpop.f32.mrf.mxu0 }
  0xde   :  { %v400_v26 = vpop.f32.mrf.mxu1 }
  0xdf   :  { %v401_v27 = vadd.f32 %v400_v26, %v380_v25 }
  0xe1   :  { %v617_v28 = vsel %vm615_vm0, %v401_v27, %v612_v24  ;;  %v622_v29 = vsel %vm615_vm0, %v612_v24, %v401_v27 }
  0xe2   :  { %631 = vst [vmem:[#allocation1 + $0x10] ss:$2 sm:$0xff] %v617_v28  ;;  %v623_v32 = vrot.slane %v622_v29, 4 }
  0xe5   :  { %v500_v30 = vpop.f32.mrf.mxu2  ;;  %v520_v31 = vpop.f32.mrf.mxu3 }
  0xe6   :  { %v521_v33 = vadd.f32 %v520_v31, %v500_v30 }
  0xe8   :  { %v613_v34 = vrot.slane %v521_v33, 4  ;;  %v460_v35 = vpop.f32.mrf.mxu0  ;;  %v480_v36 = vpop.f32.mrf.mxu1 }
  0xe9   :  { %v481_v37 = vadd.f32 %v480_v36, %v460_v35  ;;  %v638_v38 = vld.sshfl [vmem:[#allocation1 + $0x10] sm:$0xff pattern:$0x75316420]  ;;  %v639_v39 = vld.sshfl [vmem:[#allocation1 + $0x18] sm:$0xff pattern:$0x75316420] }
  0xea   :  { %1044 = vmatpush.msk.msra.mxu2 %vm615_vm0, %v638_v38  ;;  %1046 = vmatpush.msk.msra.mxu3 %vm615_vm0, %v639_v39  ;;  %835 = vst [vmem:[#allocation1 + $0x10] ss:$2 sm:$0xff] %v623_v32 }
  0xeb   :  { %v618_v40 = vsel %vm615_vm0, %v481_v37, %v613_v34  ;;  %1045 = vmatmul.msk.f32.vlgmr.msra.gmra.mxu2 %vm644_vm1, %v1901_v46  ;;  %1047 = vmatmul.msk.f32.vlgmr.msra.gmra.mxu3 %vm644_vm1, %v1901_v46  ;;  %v624_v41 = vsel %vm615_vm0, %v613_v34, %v481_v37 }
  0xec   :  { %633 = vst [vmem:[#allocation1 + $0x20] ss:$2 sm:$0xff] %v618_v40  ;;  %v625_v42 = vrot.slane %v624_v41, 4 }
  0xf1   :  { %v842_v61 = vld.sshfl [vmem:[#allocation1 + $0x10] sm:$0xff pattern:$0x75316420]  ;;  %v843_v0 = vld.sshfl [vmem:[#allocation1 + $0x18] sm:$0xff pattern:$0x75316420] }
  0xf3   :  { %v640_v44 = vld.sshfl [vmem:[#allocation1 + $0x20] sm:$0xff pattern:$0x75316420]  ;;  %v641_v45 = vld.sshfl [vmem:[#allocation1 + $0x28] sm:$0xff pattern:$0x75316420] }
  0xf4   :  { %1048 = vmatpush.msk.msrb.mxu0 %vm615_vm0, %v640_v44  ;;  %1050 = vmatpush.msk.msrb.mxu1 %vm615_vm0, %v641_v45  ;;  %837 = vst [vmem:[#allocation1 + $0x20] ss:$2 sm:$0xff] %v625_v42 }
  0xf5   :  { %1049 = vmatmul.msk.f32.vlgmr.msrb.gmra.mxu0 %vm644_vm1, %v1901_v46  ;;  %1051 = vmatmul.msk.f32.vlgmr.msrb.gmra.mxu1 %vm644_vm1, %v1901_v46 }
  0xf6   :  { %1056 = vmatpush.msk.msra.mxu0 %vm615_vm0, %v840_v43  ;;  %1058 = vmatpush.msk.msra.mxu1 %vm615_vm0, %v841_v48 }
  0xfb   :  { %v844_v49 = vld.sshfl [vmem:[#allocation1 + $0x20] sm:$0xff pattern:$0x75316420]  ;;  %v845_v50 = vld.sshfl [vmem:[#allocation1 + $0x28] sm:$0xff pattern:$0x75316420] }
  0xfc   :  { %1064 = vmatpush.msk.msrb.mxu0 %vm615_vm0, %v844_v49  ;;  %1066 = vmatpush.msk.msrb.mxu1 %vm615_vm0, %v845_v50 }
  0xfd   :  { %1057 = vmatmul.msk.f32.vlgmr.msra.gmra.mxu0 %vm644_vm1, %v1901_v46  ;;  %1059 = vmatmul.msk.f32.vlgmr.msra.gmra.mxu1 %vm644_vm1, %v1901_v46 }
 0x105   :  { %1065 = vmatmul.msk.f32.vlgmr.msrb.gmra.mxu0 %vm644_vm1, %v1901_v46  ;;  %1067 = vmatmul.msk.f32.vlgmr.msrb.gmra.mxu1 %vm644_vm1, %v1901_v46 }
 0x107   :  { %v580_v51 = vpop.f32.mrf.mxu2  ;;  %v600_v52 = vpop.f32.mrf.mxu3 }
 0x108   :  { %v601_v53 = vadd.f32 %v600_v52, %v580_v51 }
 0x109   :  { %v540_v54 = vpop.f32.mrf.mxu0  ;;  %v560_v55 = vpop.f32.mrf.mxu1 }
 0x10a   :  { %v614_v56 = vrot.slane %v601_v53, 4  ;;  %v561_v57 = vadd.f32 %v560_v55, %v540_v54 }
 0x10c   :  { %v619_v58 = vsel %vm615_vm0, %v561_v57, %v614_v56  ;;  %v626_v59 = vsel %vm615_vm0, %v614_v56, %v561_v57 }
 0x10d   :  { %635 = vst [vmem:[#allocation1 + $0x30] ss:$2 sm:$0xff] %v619_v58  ;;  %v627_v60 = vrot.slane %v626_v59, 4 }
 0x114   :  { %v642_v62 = vld.sshfl [vmem:[#allocation1 + $0x30] sm:$0xff pattern:$0x75316420]  ;;  %v643_v63 = vld.sshfl [vmem:[#allocation1 + $0x38] sm:$0xff pattern:$0x75316420] }
 0x115   :  { %1052 = vmatpush.msk.msrb.mxu2 %vm615_vm0, %v642_v62  ;;  %1054 = vmatpush.msk.msrb.mxu3 %vm615_vm0, %v643_v63  ;;  %839 = vst [vmem:[#allocation1 + $0x30] ss:$2 sm:$0xff] %v627_v60 }
 0x116   :  { %1053 = vmatmul.msk.f32.vlgmr.msrb.gmra.mxu2 %vm644_vm1, %v1901_v46  ;;  %1055 = vmatmul.msk.f32.vlgmr.msrb.gmra.mxu3 %vm644_vm1, %v1901_v46 }
 0x117   :  { %1060 = vmatpush.msk.msra.mxu2 %vm615_vm0, %v842_v61  ;;  %1062 = vmatpush.msk.msra.mxu3 %vm615_vm0, %v843_v0 }
 0x11c   :  { %v846_v1 = vld.sshfl [vmem:[#allocation1 + $0x30] sm:$0xff pattern:$0x75316420]  ;;  %v847_v2 = vld.sshfl [vmem:[#allocation1 + $0x38] sm:$0xff pattern:$0x75316420] }
 0x11d   :  { %1068 = vmatpush.msk.msrb.mxu2 %vm615_vm0, %v846_v1  ;;  %1070 = vmatpush.msk.msrb.mxu3 %vm615_vm0, %v847_v2 }
 0x11e   :  { %1061 = vmatmul.msk.f32.vlgmr.msra.gmra.mxu2 %vm644_vm1, %v1901_v46  ;;  %1063 = vmatmul.msk.f32.vlgmr.msra.gmra.mxu3 %vm644_vm1, %v1901_v46 }
 0x126   :  { %1069 = vmatmul.msk.f32.vlgmr.msrb.gmra.mxu2 %vm644_vm1, %v1901_v46  ;;  %1071 = vmatmul.msk.f32.vlgmr.msrb.gmra.mxu3 %vm644_vm1, %v1901_v46 }
 0x146   :  { %v681_v3 = vpop.f32.mrf.mxu0  ;;  %v701_v4 = vpop.f32.mrf.mxu1 }
 0x147   :  { %824 = vst [vmem:[%s2006_s3] sm:$0xff] %v681_v3 }
 0x148   :  { %825 = vst [vmem:[%s2006_s3 + $0x8] sm:$0xff] %v701_v4 }
 0x16e   :  { %v721_v5 = vpop.f32.mrf.mxu2  ;;  %v741_v6 = vpop.f32.mrf.mxu3 }
 0x16f   :  { %826 = vst [vmem:[%s2006_s3 + $0x10] sm:$0xff] %v721_v5 }
 0x170   :  { %827 = vst [vmem:[%s2006_s3 + $0x18] sm:$0xff] %v741_v6 }
 0x172   :  { %v761_v7 = vpop.f32.mrf.mxu0  ;;  %v781_v8 = vpop.f32.mrf.mxu1 }
 0x173   :  { %828 = vst [vmem:[%s2006_s3 + $0x20] sm:$0xff] %v761_v7 }
 0x174   :  { %829 = vst [vmem:[%s2006_s3 + $0x28] sm:$0xff] %v781_v8 }
 0x17a   :  { %v884_v9 = vpop.f32.mrf.mxu0  ;;  %v904_v10 = vpop.f32.mrf.mxu1 }
 0x17b   :  { %1072 = vst [vmem:[%s2006_s3 + $0x40] sm:$0xff] %v884_v9 }
 0x17c   :  { %1073 = vst [vmem:[%s2006_s3 + $0x48] sm:$0xff] %v904_v10 }
 0x182   :  { %v964_v11 = vpop.f32.mrf.mxu0  ;;  %v984_v12 = vpop.f32.mrf.mxu1 }
 0x183   :  { %1076 = vst [vmem:[%s2006_s3 + $0x60] sm:$0xff] %v964_v11 }
 0x184   :  { %1077 = vst [vmem:[%s2006_s3 + $0x68] sm:$0xff] %v984_v12 }
 0x199   :  { %v801_v13 = vpop.f32.mrf.mxu2  ;;  %v821_v14 = vpop.f32.mrf.mxu3 }
 0x19a   :  { %830 = vst [vmem:[%s2006_s3 + $0x30] sm:$0xff] %v801_v13 }
 0x19b   :  { %831 = vst [vmem:[%s2006_s3 + $0x38] sm:$0xff] %v821_v14 }
 0x1a1   :  { %v924_v15 = vpop.f32.mrf.mxu2  ;;  %v944_v16 = vpop.f32.mrf.mxu3 }
 0x1a2   :  { %1074 = vst [vmem:[%s2006_s3 + $0x50] sm:$0xff] %v924_v15 }
 0x1a3   :  { %1075 = vst [vmem:[%s2006_s3 + $0x58] sm:$0xff] %v944_v16 }
 0x1a9   :  { %v1004_v17 = vpop.f32.mrf.mxu2  ;;  %v1024_v18 = vpop.f32.mrf.mxu3 }
 0x1aa   :  { %1078 = vst [vmem:[%s2006_s3 + $0x70] sm:$0xff] %v1004_v17 }
 0x1ab   :  { %1079 = vst [vmem:[%s2006_s3 + $0x78] sm:$0xff] %v1024_v18 }

</bundles_post_ra>
